<compile_context>
chip_gen: v6e
topology: v6e:2x2x1
jax: 0.10.0
libtpu: 0.0.40
codegen_flags: <defaults>
</compile_context>

<pallas_src>
import functools

import jax
import jax.numpy as jnp
import numpy as np
from jax.experimental import pallas as pl
from jax.experimental.pallas import tpu as pltpu

_POWER_ITERS = 8           # total applications of the (scaled) Gram matrix
_SUBSPACE_WIDTH = 256      # RHS width cap: fills the 256-wide MXU on v6e/v7x


def _pick_row_tile(n_rows, n_cols, itemsize=4, budget_bytes=8 << 20, max_tile=512):
    """Largest row tile (multiple of 8, <= max_tile) whose double-buffered VMEM
    footprint stays under `budget_bytes`; falls back to the full dim for small
    arrays (a block equal to the full dim is always layout-legal)."""
    per_row = 2 * max(n_cols, 1) * itemsize          # x2 for double buffering
    t = min(max_tile, max(8, budget_bytes // per_row))
    t = max(8, (t // 8) * 8)
    if n_rows <= t:
        return n_rows
    return t


# ------------------------------------------------------------------
# Kernel 1: cross-entropy (mean reduction, class-index targets), tiled over N,
#           per-tile partial sums -> "parallel" grid (both TCs on v7x)
# ------------------------------------------------------------------
def _ce_kernel(logits_ref, targets_ref, part_ref, *, n_total, mask_rows):
    logits = logits_ref[...].astype(jnp.float32)          # (TILE_N, C)
    tgt = targets_ref[...]                                # (TILE_N, 1) int32
    tn, c = logits.shape

    # one-hot gather of the target logit: single select + row-sum (no convert/mul)
    col = jax.lax.broadcasted_iota(jnp.int32, (tn, c), 1)
    tgt_logit = jnp.sum(jnp.where(col == tgt, logits, 0.0),
                        axis=-1, keepdims=True)           # (TILE_N, 1)

    # numerically stable log-sum-exp per row
    m = jnp.max(logits, axis=-1, keepdims=True)
    lse = m + jnp.log(jnp.sum(jnp.exp(logits - m), axis=-1, keepdims=True))

    per_sample = lse - tgt_logit                          # (TILE_N, 1)
    if mask_rows:
        # only emitted when N % TILE_N != 0; masks the narrow per-row result
        # (garbage / NaN in the padded tail is selected away by the where)
        row = (jax.lax.broadcasted_iota(jnp.int32, (tn, 1), 0)
               + pl.program_id(0) * tn)
        per_sample = jnp.where(row < n_total, per_sample, 0.0)

    # lane-dense (1,128) partial-sum row for this tile
    part_ref[...] = jnp.broadcast_to(jnp.sum(per_sample), (1, 128)).astype(jnp.float32)


def cross_entropy(logits, targets):
    n, c = logits.shape
    tile_n = _pick_row_tile(n, c, itemsize=logits.dtype.itemsize,
                            budget_bytes=6 << 20, max_tile=1024)
    grid_n = pl.cdiv(n, tile_n)
    t2 = targets.astype(jnp.int32).reshape(n, 1)
    mask_rows = (n % tile_n) != 0

    # input double-buffer + f32 cast + a few full-tile temporaries + headroom
    needed = 2 * tile_n * c * logits.dtype.itemsize + 6 * tile_n * c * 4 + (2 << 20)
    vmem_limit = int(min(max(needed, 32 << 20), 48 << 20))

    parts = pl.pallas_call(
        functools.partial(_ce_kernel, n_total=n, mask_rows=mask_rows),
        out_shape=jax.ShapeDtypeStruct((grid_n, 128), jnp.float32),
        grid_spec=pltpu.PrefetchScalarGridSpec(
            num_scalar_prefetch=0,
            grid=(grid_n,),
            in_specs=[
                pl.BlockSpec((tile_n, c), lambda i: (i, 0)),
                pl.BlockSpec((tile_n, 1), lambda i: (i, 0)),
            ],
            out_specs=pl.BlockSpec((1, 128), lambda i: (i, 0)),
        ),
        compiler_params=pltpu.CompilerParams(
            dimension_semantics=("parallel",),      # independent partial sums
            vmem_limit_bytes=vmem_limit),
    )(logits, t2)
    return jnp.sum(parts[:, 0]) / jnp.float32(n)


# ------------------------------------------------------------------
# Kernel 2: spectral norm^2 (wide power iteration on W^T W) + Frobenius norm^2,
#           bf16-operand Gram accumulated over row-blocks of W
# ------------------------------------------------------------------
def _reg_kernel(w_ref, spec_ref, fro_ref, g_ref, fro_acc_ref, *,
                m_total, n_iters, width, mask_rows):
    i = pl.program_id(0)
    w = w_ref[...].astype(jnp.float32)                    # (TILE_M, K)
    tm, k = w.shape

    if mask_rows:
        # only emitted when M % TILE_M != 0 (grid tail padding)
        row = jax.lax.broadcasted_iota(jnp.int32, (tm, 1), 0) + i * tm
        w = jnp.where(row < m_total, w, 0.0)

    @pl.when(i == 0)
    def _():
        g_ref[...] = jnp.zeros_like(g_ref)
        fro_acc_ref[0, 0] = jnp.float32(0.0)

    # G += W_blk^T W_blk: bf16 MXU operands, f32 accumulation, no transpose
    wb = w.astype(jnp.bfloat16)
    g_ref[...] += jax.lax.dot_general(
        wb, wb, dimension_numbers=(((0,), (0,)), ((), ())),
        preferred_element_type=jnp.float32)
    fro_acc_ref[0, 0] += jnp.sum(w * w)                   # Frobenius stays f32

    @pl.when(i == pl.num_programs(0) - 1)
    def _():
        fro = fro_acc_ref[0, 0]
        fro_ref[0, 0] = fro

        # scale by ||W||_F^2 (= trace(G)) IN PLACE so eigenvalues of g lie in
        # (0, 1] and no second (K,K) f32 slab is materialized
        g_ref[...] = g_ref[...] * (jnp.float32(1.0) / (fro + jnp.float32(1e-30)))
        g_bf = g_ref[...].astype(jnp.bfloat16)            # bf16 copy for the loop

        # deterministic well-mixed pseudo-random (K, width) start block
        ri = jax.lax.broadcasted_iota(jnp.int32, (k, width), 0)
        ci = jax.lax.broadcasted_iota(jnp.int32, (k, width), 1)
        h = ri * jnp.int32(40503) + ci * jnp.int32(12829) + jnp.int32(7)
        h = h * jnp.int32(747796405)
        h = h ^ (h >> 13)
        h = h * jnp.int32(118999771)
        v = ((h & jnp.int32(0xFFFF)).astype(jnp.float32)
             * jnp.float32(1.0 / 65536.0) - jnp.float32(0.5))

        # unrolled wide subspace iteration on bf16 operands (f32 accumulate);
        # normalize every 2 steps to keep column norms away from underflow
        for it in range(n_iters - 1):
            v = jnp.dot(g_bf, v.astype(jnp.bfloat16),
                        preferred_element_type=jnp.float32)
            if (it + 1) % 2 == 0:
                nrm = (jnp.sqrt(jnp.sum(v * v, axis=0, keepdims=True))
                       + jnp.float32(1e-30))
                v = v / nrm

        # final application in f32, reused as the Rayleigh-quotient numerator
        gv = jnp.dot(g_ref[...], v, preferred_element_type=jnp.float32)
        num = jnp.sum(gv * v, axis=0, keepdims=True)      # (1, width)
        den = jnp.sum(v * v, axis=0, keepdims=True) + jnp.float32(1e-30)
        lam = jnp.max(num / den)
        spec_ref[0, 0] = lam * fro                        # sigma_max(W)^2


def spectral_and_fro(w):
    m, k = w.shape
    width = int(min(_SUBSPACE_WIDTH, max(128, ((k + 127) // 128) * 128)))

    # tighten W tiles when the (K,K) Gram scratch itself is large (v7x: 64 MiB VMEM)
    gram_bytes = 4 * k * k
    w_budget = (4 << 20) if gram_bytes > (24 << 20) else (8 << 20)
    tile_m = _pick_row_tile(m, k, itemsize=w.dtype.itemsize, budget_bytes=w_budget)
    grid_m = pl.cdiv(m, tile_m)
    mask_rows = (m % tile_m) != 0

    # f32 Gram scratch + bf16 Gram copy + double-buffered W tile
    # + a few (K,width) f32 temporaries + headroom
    needed = (4 * k * k + 2 * k * k + 2 * tile_m * k * w.dtype.itemsize
              + 6 * k * width * 4 + (4 << 20))
    vmem_limit = int(min(max(needed, 32 << 20), 48 << 20))
    # TODO(synk): for K large enough that the (K,K) Gram scratch no longer fits
    # VMEM (K >~ 2500 on v7x), the Gram/power stage itself needs K-tiling; the
    # optional v7x 2-TC split of the Gram accumulation is also left out here.

    spec, fro = pl.pallas_call(
        functools.partial(_reg_kernel, m_total=m, n_iters=_POWER_ITERS,
                          width=width, mask_rows=mask_rows),
        out_shape=(
            jax.ShapeDtypeStruct((1, 1), jnp.float32),
            jax.ShapeDtypeStruct((1, 1), jnp.float32),
        ),
        grid_spec=pltpu.PrefetchScalarGridSpec(
            num_scalar_prefetch=0,
            grid=(grid_m,),
            in_specs=[pl.BlockSpec((tile_m, k), lambda i: (i, 0))],
            out_specs=(
                pl.BlockSpec(memory_space=pltpu.MemorySpace.SMEM),
                pl.BlockSpec(memory_space=pltpu.MemorySpace.SMEM),
            ),
            scratch_shapes=[
                pltpu.VMEM((k, k), jnp.float32),     # Gram accumulator
                pltpu.SMEM((1, 1), jnp.float32),     # Frobenius accumulator
            ],
        ),
        compiler_params=pltpu.CompilerParams(
            dimension_semantics=("arbitrary",),      # single running accumulator
            vmem_limit_bytes=vmem_limit),
    )(w)
    return spec[0, 0], fro[0, 0]


# ------------------------------------------------------------------
# SmoothSailing forward (mirrors the PyTorch module semantics)
# ------------------------------------------------------------------
def smooth_sailing_forward(inputs, targets, W=None, beta=0.0):
    base_loss = cross_entropy(inputs, targets)
    if W is None or beta == 0:
        return base_loss
    spec_sq, fro_sq = spectral_and_fro(W)
    # In the PyTorch code the first (min-dim normalized) reg_loss is overwritten;
    # only the W.shape[1]-normalized version is returned.
    reg_loss = base_loss + beta * 0.5 * (spec_sq - fro_sq / W.shape[1])
    return base_loss, reg_loss


if __name__ == "__main__":
    key = jax.random.PRNGKey(0)
    k_logits, k_tgt, k_w = jax.random.split(key, 3)

    N, C = 8, 16          # batch, classes
    M, K = 16, 32         # weight matrix shape

    logits = jax.random.normal(k_logits, (N, C), dtype=jnp.float32)
    targets = jax.random.randint(k_tgt, (N,), 0, C, dtype=jnp.int32)
    W = jax.random.normal(k_w, (M, K), dtype=jnp.float32)
    beta = 0.1

    # beta == 0 path (returns only the base loss)
    base_only = smooth_sailing_forward(logits, targets, W=None, beta=0.0)
    jax.block_until_ready(base_only)

    # regularized path (returns (base_loss, reg_loss))
    base_loss, reg_loss = smooth_sailing_forward(logits, targets, W=W, beta=beta)
    jax.block_until_ready((base_loss, reg_loss))

    # ---- numpy reference checks (loose tolerance on the power-method spectral norm)
    lg = np.asarray(logits, dtype=np.float64)
    tg = np.asarray(targets)
    mx = lg.max(axis=1, keepdims=True)
    lse = mx + np.log(np.exp(lg - mx).sum(axis=1, keepdims=True))
    ce_ref = float(np.mean(lse[:, 0] - lg[np.arange(N), tg]))

    Wn = np.asarray(W, dtype=np.float64)
    spec_ref = float(np.linalg.svd(Wn, compute_uv=False)[0] ** 2)
    fro_ref = float((Wn ** 2).sum())
    reg_ref = ce_ref + beta * 0.5 * (spec_ref - fro_ref / Wn.shape[1])

    spec_sq, fro_sq = spectral_and_fro(W)
    assert abs(float(base_only) - ce_ref) < 2e-3
    assert abs(float(base_loss) - ce_ref) < 2e-3
    assert abs(float(fro_sq) - fro_ref) < 1e-3 * abs(fro_ref)
    assert abs(float(spec_sq) - spec_ref) < 5e-2 * abs(spec_ref)
    assert abs(float(reg_loss) - reg_ref) < 5e-2 * max(1.0, abs(reg_ref))

    print("KERNEL_OK")
</pallas_src>

<mosaic_0001>
module attributes {stable_mosaic.version = 11 : i64} {
  func.func @_ce_kernel(%arg0: i32, %arg1: memref<8x16xf32, #tpu.memory_space<vmem>>, %arg2: memref<8x1xi32, #tpu.memory_space<vmem>>, %arg3: memref<1x128xf32, #tpu.memory_space<vmem>>) attributes {dimension_semantics = [#tpu.dimension_semantics<parallel>], iteration_bounds = array<i64: 1>, scalar_prefetch = 0 : i64, scratch_operands = 0 : i64, tpu.core_type = #tpu.core_type<tc>, window_params = [{transform_indices = @transform_0, window_bounds = array<i64: 8, 16>}, {transform_indices = @transform_1, window_bounds = array<i64: 8, 1>}, {transform_indices = @transform_2, window_bounds = array<i64: 1, 128>}]} {
    %c0 = arith.constant 0 : index
    %c0_0 = arith.constant 0 : index
    %0 = vector.load %arg1[%c0, %c0_0] : memref<8x16xf32, #tpu.memory_space<vmem>>, vector<8x16xf32>
    %c0_1 = arith.constant 0 : index
    %c0_2 = arith.constant 0 : index
    %1 = vector.load %arg2[%c0_1, %c0_2] : memref<8x1xi32, #tpu.memory_space<vmem>>, vector<8x1xi32>
    %2 = tpu.iota {dimensions = array<i32: 1>} : vector<8x16xi32>
    %3 = vector.broadcast %1 : vector<8x1xi32> to vector<8x16xi32>
    %4 = arith.cmpi eq, %2, %3 : vector<8x16xi32>
    %cst = arith.constant 0.000000e+00 : f32
    %5 = vector.broadcast %cst : f32 to vector<8x16xf32>
    %6 = arith.select %4, %0, %5 : vector<8x16xi1>, vector<8x16xf32>
    %cst_3 = arith.constant dense<0.000000e+00> : vector<8xf32>
    %7 = vector.multi_reduction <add>, %6, %cst_3 [1] : vector<8x16xf32> to vector<8xf32>
    %8 = vector.shape_cast %7 : vector<8xf32> to vector<8x1xf32>
    %cst_4 = arith.constant dense<0xFF800000> : vector<8xf32>
    %9 = vector.multi_reduction <maximumf>, %0, %cst_4 [1] : vector<8x16xf32> to vector<8xf32>
    %10 = vector.shape_cast %9 : vector<8xf32> to vector<8x1xf32>
    %11 = vector.broadcast %10 : vector<8x1xf32> to vector<8x16xf32>
    %12 = arith.subf %0, %11 : vector<8x16xf32>
    %13 = math.exp %12 : vector<8x16xf32>
    %cst_5 = arith.constant dense<0.000000e+00> : vector<8xf32>
    %14 = vector.multi_reduction <add>, %13, %cst_5 [1] : vector<8x16xf32> to vector<8xf32>
    %15 = vector.shape_cast %14 : vector<8xf32> to vector<8x1xf32>
    %16 = math.log %15 : vector<8x1xf32>
    %17 = arith.addf %10, %16 : vector<8x1xf32>
    %18 = arith.subf %17, %8 : vector<8x1xf32>
    %19 = vector.shape_cast %18 : vector<8x1xf32> to vector<1x8x1xf32>
    %cst_6 = arith.constant dense<0.000000e+00> : vector<1xf32>
    %20 = vector.multi_reduction <add>, %19, %cst_6 [1, 2] : vector<1x8x1xf32> to vector<1xf32>
    %21 = vector.shape_cast %20 : vector<1xf32> to vector<1x1x1xf32>
    %22 = vector.extract %21[0, 0, 0] : f32 from vector<1x1x1xf32>
    %23 = vector.broadcast %22 : f32 to vector<1x128xf32>
    %c0_7 = arith.constant 0 : index
    %c0_8 = arith.constant 0 : index
    %24 = vector.load %arg3[%c0_7, %c0_8] : memref<1x128xf32, #tpu.memory_space<vmem>>, vector<1x128xf32>
    tpu.vector_store %arg3[%c0_7, %c0_8], %23 {strides = array<i32>} : memref<1x128xf32, #tpu.memory_space<vmem>>, vector<1x128xf32>,
    return
  }
  func.func @transform_0(%arg0: i32) -> (i32, i32) {
    %c0_i32 = arith.constant 0 : i32
    %c0_i32_0 = arith.constant 0 : i32
    return %arg0, %c0_i32 : i32, i32
  }
  func.func @transform_1(%arg0: i32) -> (i32, i32) {
    %c0_i32 = arith.constant 0 : i32
    %c0_i32_0 = arith.constant 0 : i32
    return %arg0, %c0_i32 : i32, i32
  }
  func.func @transform_2(%arg0: i32) -> (i32, i32) {
    %c0_i32 = arith.constant 0 : i32
    %c0_i32_0 = arith.constant 0 : i32
    return %arg0, %c0_i32 : i32, i32
  }
}

</mosaic_0001>

<bundles_post_ra>
// kernel: tpu_custom_call.1
= control target key start
LH: loop header
LB: loop body
LE: loop exit
PB: predicated region body
PF: predicated region fallthrough
CT: control target
= control target key end

     0   :  { %vm21_vm0 = vcmask 130048   ;;  %s125_s0 = inlined_call_operand.vmem [shape: f32[8,16], index: 0, kind: input, shape index: {}]   ;;  %s126_s1 = inlined_call_operand.vmem [shape: s32[8,1], index: 1, kind: input, shape index: {}]   ;;  %s127_s2 = inlined_call_operand.hbm [shape: f32[1,128], index: 2, kind: output, shape index: {}]  }
   0x1   :  { %v12_v0 = vld [vmem:[%s125_s0] sm:$0xff] }
   0x2   :  { %7 = vsyncpa [#allocation3], 0  ;;  %v25_v1 = vsel %vm21_vm0, %v12_v0, -inf  ;;  %v96_v2 = vmov 0   ;;  %v13_v3 = vld [vmem:[%s126_s1] sm:$0xff]  ;;  %v14_v7 = vlaneseq  ;;  %vm38_vm2 = vcmask 7168  }
   0x3   :  { %69 = vset.pattern.permute.xlu0 %v96_v2  ;;  %s97_s0 = smov [#allocation2]  }
   0x4   :  { %26 = vmax.xlane.f32.xlu0 %v25_v1  ;;  %v15_v8 = vand.u32 127, %v14_v7  ;;  %s57_s1 = sshll.u32 %s97_s0, 4  ;;  %s58_s1 = int_to_ptr.vmem [resolvable:$true] %s57_s1 }
   0x5   :  { %s74_s14 = scalar_lea.vmem %s58_s1, 16  ;;  %s78_s15 = scalar_lea.vmem %s58_s1, 32 }
   0x6   :  { %p75_p0 = scmp.ne.s32.totalorder %s58_s1, %s74_s14  ;;  %p79_p1 = scmp.lt.s32.totalorder %s58_s1, %s58_s1 }
   0x7   :  { %p80_p2 = scmp.lt.s32.totalorder %s78_s15, %s74_s14 }
   0x9   :  { %p81_p3 = por %p80_p2, %p79_p1 }
   0xb   :  { %p82_p4 = pnand %p81_p3, %p75_p0 }
  0x1a   :  { %17 = vperm.xlu0 %69, %v13_v3  }
  0x8d   :  { %v27_v4 = vpop.xlane.xlu0 %26 }
  0x8e   :  { %v28_v5 = vsub.f32 %v12_v0, %v27_v4 }
  0x90   :  { %v29_v6 = vmul.f32 1.442695, %v28_v5 }
  0x92   :  { %70 = vpow2.f32 %v29_v6 }
  0x95   :  { %v18_v9 = vpop.permute.xlu0 %17 }
  0x96   :  { %vm19_vm1 = vcmp.eq.s32.totalorder %v15_v8, %v18_v9 }
  0x97   :  { %v20_v11 = vsel %vm19_vm1, %v12_v0, 0.0 }
  0x98   :  { %v22_v13 = vsel %vm21_vm0, %v20_v11, 0.0 }
  0x9f   :  { %v71_v10 = vpop.eup %70 }
  0xa0   :  { %v31_v12 = vsel %vm21_vm0, %v71_v10, 0.0 }
  0xa1   :  { %32 = vadd.xlane.f32.xlu1 %v31_v12 }
  0xa5   :  { %23 = vadd.xlane.f32.xlu1 %v22_v13 }
 0x12a   :  { %v33_v14 = vpop.xlane.xlu1 %32 }
 0x12b   :  { %72 = vlog2.f32 %v33_v14 }
 0x12e   :  { %v24_v17 = vpop.xlane.xlu1 %23 }
 0x138   :  { %v73_v15 = vpop.eup %72 }
 0x139   :  { %v35_v16 = vmul.f32 0.6931472, %v73_v15 }
 0x13b   :  { %v36_v18 = vadd.f32 %v35_v16, %v27_v4 }
 0x13d   :  { %v37_v19 = vsub.f32 %v36_v18, %v24_v17 }
 0x13f   :  { %v39_v20 = vsel %vm38_vm2, %v37_v19, 0.0 }
 0x140   :  { %40 = vadd.xlane.f32.xlu1 %v39_v20 }
 0x1c9   :  { %v41_v21 = vpop.xlane.xlu1 %40 }
 0x1ca   :  { %v42_v22 = vrot.slane %v41_v21, 4 }
 0x1cc   :  { %v43_v23 = vadd.f32 %v42_v22, %v41_v21 }
 0x1ce   :  { %v44_v24 = vrot.slane %v43_v23, 2 }
 0x1d0   :  { %v45_v25 = vadd.f32 %v44_v24, %v43_v23 }
 0x1d2   :  { %v46_v26 = vrot.slane %v45_v25, 1 }
 0x1d4   :  { %v47_v27 = vadd.f32 %v46_v26, %v45_v25 }
 0x1d6   :  { %65 = vpush %v47_v27 }
 0x207   :  { %s66_s13 = spop %65 }
 0x208   :  { %v49_v28 = vstv %s66_s13 }
 0x209   :  { %50 = vst [vmem:[#allocation2] sm:$0x1] %v49_v28 }
 0x20a   :  { %85 = shalt.err (!%p82_p4)
}
 0x20b   :  { %60 = dma.vmem_to_hbm [thread:$0]  %s58_s1, 16, %s127_s2, [#allocation3]  }
 0x20c   :  { %94 = dma.done.wait [#allocation3], 16  }
 0x20d   :  { %95 = vsyncadd [#allocation3], 4294967280 }
 0x20e   :  { %64 = vsyncpa [#allocation3], 1 }

</bundles_post_ra>
